<compile_context>
chip_gen: v7x
topology: tpu7x:2x2x1
jax: 0.10.0
libtpu: 0.0.40
codegen_flags: <defaults>
</compile_context>

<pallas_src>
import jax
import jax.numpy as jnp
from jax import lax
from jax.experimental import pallas as pl
from jax.experimental.pallas import tpu as pltpu


# Batch tile (lane axis), multiple of 256.  With the feature-major layout the
# per-step VMEM footprint at Bt=2048 is ~2.5 MiB (x: 2x0.5 MiB bf16,
# out: 2x64 KiB, packed weights: 2x84 KiB, intermediates < 1 MiB) -- far below
# the 32 MiB scoped default and v7x's 64 MiB physical VMEM, so the same tile
# is safe on v5e / v6e / v7x.  Sweep 2048-8192 if tuning further; keeping it
# at 2048 also guarantees >=2 grid steps (both v7x TensorCores busy) once
# B > 2048.
MAX_BATCH_TILE = 2048

# Row/column offsets inside the packed weight operand (sublane-aligned rows).
_BIAS_COL = 120   # bias column (weights occupy cols 0:90 at most)


# ----------------------------- Pallas kernel ------------------------------ #
def cnn_kernel(x_ref, w_ref, o_ref):
    # x block: (Bt, 12) bf16, batch-major in HBM.  Cast once to f32; the
    # contraction below consumes x's last axis directly so no host transpose
    # of x is needed.
    x = x_ref[...].astype(jnp.float32)                      # (Bt, 12)

    # Static slices of the single packed VMEM-resident weight/bias operand.
    w1t = w_ref[0:90, 0:12]                                 # (90, 12)  conv1 (banded)^T
    b1 = w_ref[0:90, _BIAS_COL:_BIAS_COL + 1]               # (90, 1)
    w2t = w_ref[96:126, 0:90]                               # (30, 90)  conv2 (banded)^T
    b2 = w_ref[96:126, _BIAS_COL:_BIAS_COL + 1]             # (30, 1)
    wl1t = w_ref[128:158, 0:30]                             # (30, 30)  linear1 (permuted)^T
    bl1 = w_ref[128:158, _BIAS_COL:_BIAS_COL + 1]           # (30, 1)
    wl2 = w_ref[160:161, 0:30]                              # (1, 30)   linear2
    bl2 = w_ref[160:161, _BIAS_COL:_BIAS_COL + 1]           # (1, 1)

    # conv1 + ReLU: contract x's last axis against W1T's last axis -> (90, Bt)
    y1 = jnp.maximum(
        lax.dot_general(w1t, x, (((1,), (1,)), ((), ())),
                        preferred_element_type=jnp.float32) + b1, 0.0)
    # conv2 + ReLU: (30, 90) @ (90, Bt) -> (30, Bt)
    y2 = jnp.maximum(
        jnp.dot(w2t, y1, preferred_element_type=jnp.float32) + b2, 0.0)
    # linear1 + ReLU: (30, 30) @ (30, Bt) -> (30, Bt)
    z = jnp.maximum(
        jnp.dot(wl1t, y2, preferred_element_type=jnp.float32) + bl1, 0.0)
    # linear2: (1, 30) @ (30, Bt) -> (1, Bt)   lane-dense output row
    o_ref[...] = jnp.dot(wl2, z, preferred_element_type=jnp.float32) + bl2


# ----------------------- host-side weight folding -------------------------- #
def fold_params(params):
    """Fold the torch weights into ONE packed (168, 128) f32 array.

    Called once (hoisted out of the per-forward path).
    Layout (rows sublane-aligned):
      rows   0: 90, cols  0:12 -> W1b^T (conv1 as block-banded matmul)
      rows   0: 90, col   120  -> b1    (conv1 bias tiled over 6 time steps)
      rows  96:126, cols  0:90 -> W2b^T (conv2 as block-banded matmul)
      rows  96:126, col   120  -> b2    (conv2 bias tiled over 2 time steps)
      rows 128:158, cols  0:30 -> Wl1^T (linear1, rows permuted for torch .view)
      rows 128:158, col   120  -> linear1 bias
      row  160    , cols  0:30 -> linear2 weight
      row  160    , col   120  -> linear2 bias
    """
    w1t = params["conv1_w"][:, 0, :].T                       # (7, 15)
    W1b = jnp.zeros((12, 90), jnp.float32)                   # column block t = taps t..t+6
    for t in range(6):
        W1b = W1b.at[t:t + 7, 15 * t:15 * (t + 1)].set(w1t)
    b1 = jnp.tile(params["conv1_b"], 6)                      # (90,)

    w2k = jnp.transpose(params["conv2_w"], (2, 1, 0))        # (5, in=15, out=15)
    W2b = jnp.zeros((90, 30), jnp.float32)
    for l in range(2):
        for k in range(5):
            W2b = W2b.at[15 * (l + k):15 * (l + k + 1),
                         15 * l:15 * (l + 1)].set(w2k[k])
    b2 = jnp.tile(params["conv2_b"], 2)                       # (30,)

    # linear1 re-ordered for the [t0 channels | t1 channels] activation layout.
    # torch flatten is channel-major: flat[:, 2c + l] = conv2_out[:, c, l].
    wl1 = params["lin1_w"].T                                  # (in=30, out=30)
    Wl1 = jnp.concatenate([wl1[0::2, :], wl1[1::2, :]], axis=0)  # (30, 30)

    P = jnp.zeros((168, 128), jnp.float32)
    P = P.at[0:90, 0:12].set(W1b.T)
    P = P.at[0:90, _BIAS_COL].set(b1)
    P = P.at[96:126, 0:90].set(W2b.T)
    P = P.at[96:126, _BIAS_COL].set(b2)
    P = P.at[128:158, 0:30].set(Wl1.T)
    P = P.at[128:158, _BIAS_COL].set(params["lin1_b"])
    P = P.at[160, 0:30].set(params["lin2_w"][0])
    P = P.at[160, _BIAS_COL].set(params["lin2_b"][0])
    return P


def _round_up(n, m):
    return ((n + m - 1) // m) * m


# ------------------------------- wrapper ----------------------------------- #
@jax.jit
def cnn_forward(x, packed_w):
    """x: (B, 1, 12) float32 (nn.Conv1d NCL input); packed_w: fold_params(...)."""
    B = x.shape[0]
    assert x.shape[1:] == (1, 12), "module implies in_channels=1, length=12"
    # bf16 input halves HBM traffic (biggest win on v5e/v6e); matmul math and
    # bias/ReLU stay f32 inside the kernel.
    x2d = x.reshape(B, 12).astype(jnp.bfloat16)

    # Batch tiling on the lane axis: Bt multiple of 256, pad B up to Bt*grid.
    Bt = min(MAX_BATCH_TILE, _round_up(B, 256))
    Bpad = _round_up(B, Bt)
    if Bpad != B:
        x2d = jnp.pad(x2d, ((0, Bpad - B), (0, 0)))

    x_spec = pl.BlockSpec((Bt, 12), lambda i: (i, 0))          # batch-major input tile
    w_spec = pl.BlockSpec((168, 128), lambda i: (0, 0))        # VMEM-resident weights
    o_spec = pl.BlockSpec((1, Bt), lambda i: (0, i))           # lane-dense output row

    out = pl.pallas_call(
        cnn_kernel,
        out_shape=jax.ShapeDtypeStruct((1, Bpad), jnp.float32),
        grid=(Bpad // Bt,),
        in_specs=[x_spec, w_spec],
        out_specs=o_spec,
        compiler_params=pltpu.CompilerParams(
            dimension_semantics=("parallel",)),   # megacore sharding on v7x
    )(x2d, packed_w)

    # Padded batch columns hold bias-propagated garbage; slice before any use.
    return out[0, :B][:, None]                                 # (B, 1)


# ---------------------- plain-JAX reference (for check) -------------------- #
def ref_forward(x, params):
    dn = ("NCH", "OIH", "NCH")
    y = lax.conv_general_dilated(x, params["conv1_w"], (1,), "VALID",
                                 dimension_numbers=dn)
    y = jnp.maximum(y + params["conv1_b"][None, :, None], 0.0)
    y = lax.conv_general_dilated(y, params["conv2_w"], (1,), "VALID",
                                 dimension_numbers=dn)
    y = jnp.maximum(y + params["conv2_b"][None, :, None], 0.0)   # (B, 15, 2)
    s, b, h = y.shape
    flat = y.reshape(s, b * h)                                   # torch .view
    z = jnp.maximum(flat @ params["lin1_w"].T + params["lin1_b"], 0.0)
    return z @ params["lin2_w"].T + params["lin2_b"]


# ------------------------- deterministic parameters ------------------------ #
def init_params(key):
    ks = jax.random.split(key, 8)

    def u(k, shape, fan_in):
        bound = 1.0 / (fan_in ** 0.5)
        return jax.random.uniform(k, shape, jnp.float32, -bound, bound)

    return {
        "conv1_w": u(ks[0], (15, 1, 7), 1 * 7),
        "conv1_b": u(ks[1], (15,), 1 * 7),
        "conv2_w": u(ks[2], (15, 15, 5), 15 * 5),
        "conv2_b": u(ks[3], (15,), 15 * 5),
        "lin1_w": u(ks[4], (30, 30), 30),
        "lin1_b": u(ks[5], (30,), 30),
        "lin2_w": u(ks[6], (1, 30), 30),
        "lin2_b": u(ks[7], (1,), 30),
    }


if __name__ == "__main__":
    kp, kx = jax.random.split(jax.random.PRNGKey(0))
    params = init_params(kp)
    # batch=2, in_channels=1, length=12 (length forced by Linear(30, ...) in the module)
    x = jax.random.normal(kx, (2, 1, 12), jnp.float32)

    packed = fold_params(params)          # one-time folding, hoisted out of the forward path
    out = cnn_forward(x, packed)
    out = jax.block_until_ready(out)

    ref = ref_forward(x, params)
    assert out.shape == (2, 1)
    # Tolerance loosened for the bf16 input cast (accumulation stays f32).
    assert jnp.allclose(out, ref, atol=2e-2, rtol=2e-2), (out, ref)
    print("KERNEL_OK")
</pallas_src>

<mosaic_0001>
module attributes {stable_mosaic.version = 11 : i64} {
  func.func @cnn_kernel(%arg0: i32, %arg1: memref<256x12xbf16, #tpu.memory_space<vmem>>, %arg2: memref<168x128xf32, #tpu.memory_space<vmem>>, %arg3: memref<1x256xf32, #tpu.memory_space<vmem>>) attributes {dimension_semantics = [#tpu.dimension_semantics<parallel>], iteration_bounds = array<i64: 1>, scalar_prefetch = 0 : i64, scratch_operands = 0 : i64, tpu.core_type = #tpu.core_type<tc>, window_params = [{transform_indices = @transform_0, window_bounds = array<i64: 256, 12>}, {pipeline_mode = #tpu.pipeline_mode<synchronous>, transform_indices = @transform_1, window_bounds = array<i64: 168, 128>}, {transform_indices = @transform_2, window_bounds = array<i64: 1, 256>}]} {
    %c0 = arith.constant 0 : index
    %c0_0 = arith.constant 0 : index
    %0 = vector.load %arg1[%c0, %c0_0] : memref<256x12xbf16, #tpu.memory_space<vmem>>, vector<256x12xbf16>
    %1 = arith.extf %0 : vector<256x12xbf16> to vector<256x12xf32>
    %c0_1 = arith.constant 0 : index
    %c0_2 = arith.constant 0 : index
    %2 = vector.load %arg2[%c0_1, %c0_2] : memref<168x128xf32, #tpu.memory_space<vmem>>, vector<90x12xf32>
    %c0_3 = arith.constant 0 : index
    %c120 = arith.constant 120 : index
    %3 = vector.load %arg2[%c0_3, %c120] : memref<168x128xf32, #tpu.memory_space<vmem>>, vector<90x1xf32>
    %c96 = arith.constant 96 : index
    %c0_4 = arith.constant 0 : index
    %4 = vector.load %arg2[%c96, %c0_4] : memref<168x128xf32, #tpu.memory_space<vmem>>, vector<30x90xf32>
    %c96_5 = arith.constant 96 : index
    %c120_6 = arith.constant 120 : index
    %5 = vector.load %arg2[%c96_5, %c120_6] : memref<168x128xf32, #tpu.memory_space<vmem>>, vector<30x1xf32>
    %c128 = arith.constant 128 : index
    %c0_7 = arith.constant 0 : index
    %6 = vector.load %arg2[%c128, %c0_7] : memref<168x128xf32, #tpu.memory_space<vmem>>, vector<30x30xf32>
    %c128_8 = arith.constant 128 : index
    %c120_9 = arith.constant 120 : index
    %7 = vector.load %arg2[%c128_8, %c120_9] : memref<168x128xf32, #tpu.memory_space<vmem>>, vector<30x1xf32>
    %c160 = arith.constant 160 : index
    %c0_10 = arith.constant 0 : index
    %8 = vector.load %arg2[%c160, %c0_10] : memref<168x128xf32, #tpu.memory_space<vmem>>, vector<1x30xf32>
    %c160_11 = arith.constant 160 : index
    %c120_12 = arith.constant 120 : index
    %9 = vector.load %arg2[%c160_11, %c120_12] : memref<168x128xf32, #tpu.memory_space<vmem>>, vector<1x1xf32>
    %cst = arith.constant dense<0.000000e+00> : vector<90x256xf32>
    %10 = tpu.matmul %2, %1, %cst {dimension_numbers = #tpu.dot_dimension_numbers<[1], [1], [0], [0], [0, 0, 1, 0], [], []>} : vector<90x12xf32>, vector<256x12xf32>, vector<90x256xf32> -> vector<90x256xf32>
    %11 = vector.broadcast %3 : vector<90x1xf32> to vector<90x256xf32>
    %12 = arith.addf %10, %11 : vector<90x256xf32>
    %cst_13 = arith.constant 0.000000e+00 : f32
    %13 = vector.broadcast %cst_13 : f32 to vector<90x256xf32>
    %14 = arith.maximumf %12, %13 : vector<90x256xf32>
    %cst_14 = arith.constant dense<0.000000e+00> : vector<30x256xf32>
    %15 = tpu.matmul %4, %14, %cst_14 {dimension_numbers = #tpu.dot_dimension_numbers<[1], [0], [0], [1], [0, 0, 1, 1], [], []>} : vector<30x90xf32>, vector<90x256xf32>, vector<30x256xf32> -> vector<30x256xf32>
    %16 = vector.broadcast %5 : vector<30x1xf32> to vector<30x256xf32>
    %17 = arith.addf %15, %16 : vector<30x256xf32>
    %cst_15 = arith.constant 0.000000e+00 : f32
    %18 = vector.broadcast %cst_15 : f32 to vector<30x256xf32>
    %19 = arith.maximumf %17, %18 : vector<30x256xf32>
    %cst_16 = arith.constant dense<0.000000e+00> : vector<30x256xf32>
    %20 = tpu.matmul %6, %19, %cst_16 {dimension_numbers = #tpu.dot_dimension_numbers<[1], [0], [0], [1], [0, 0, 1, 1], [], []>} : vector<30x30xf32>, vector<30x256xf32>, vector<30x256xf32> -> vector<30x256xf32>
    %21 = vector.broadcast %7 : vector<30x1xf32> to vector<30x256xf32>
    %22 = arith.addf %20, %21 : vector<30x256xf32>
    %cst_17 = arith.constant 0.000000e+00 : f32
    %23 = vector.broadcast %cst_17 : f32 to vector<30x256xf32>
    %24 = arith.maximumf %22, %23 : vector<30x256xf32>
    %cst_18 = arith.constant dense<0.000000e+00> : vector<1x256xf32>
    %25 = tpu.matmul %8, %24, %cst_18 {dimension_numbers = #tpu.dot_dimension_numbers<[1], [0], [0], [1], [0, 0, 1, 1], [], []>} : vector<1x30xf32>, vector<30x256xf32>, vector<1x256xf32> -> vector<1x256xf32>
    %26 = vector.broadcast %9 : vector<1x1xf32> to vector<1x256xf32>
    %27 = arith.addf %25, %26 : vector<1x256xf32>
    %c0_19 = arith.constant 0 : index
    %c0_20 = arith.constant 0 : index
    %28 = vector.load %arg3[%c0_19, %c0_20] : memref<1x256xf32, #tpu.memory_space<vmem>>, vector<1x256xf32>
    tpu.vector_store %arg3[%c0_19, %c0_20], %27 {strides = array<i32>} : memref<1x256xf32, #tpu.memory_space<vmem>>, vector<1x256xf32>,
    return
  }
  func.func @transform_0(%arg0: i32) -> (i32, i32) {
    %c0_i32 = arith.constant 0 : i32
    %c0_i32_0 = arith.constant 0 : i32
    return %arg0, %c0_i32 : i32, i32
  }
  func.func @transform_1(%arg0: i32) -> (i32, i32) {
    %c0_i32 = arith.constant 0 : i32
    %c0_i32_0 = arith.constant 0 : i32
    %c0_i32_1 = arith.constant 0 : i32
    return %c0_i32, %c0_i32_0 : i32, i32
  }
  func.func @transform_2(%arg0: i32) -> (i32, i32) {
    %c0_i32 = arith.constant 0 : i32
    %c0_i32_0 = arith.constant 0 : i32
    return %c0_i32, %arg0 : i32, i32
  }
}

</mosaic_0001>

<bundles_post_ra>
// kernel: cnn_forward.1
= control target key start
LH: loop header
LB: loop body
LE: loop exit
PB: predicated region body
PF: predicated region fallthrough
CT: control target
= control target key end

     0   :  { %7 = vsyncpa [#allocation3], 0  ;;  %s1151_s9 = smov [#allocation2]   ;;  %s1392_s0 = inlined_call_operand.vmem [shape: bf16[256,12], index: 0, kind: input, shape index: {}]   ;;  %s1393_s1 = inlined_call_operand.hbm [shape: f32[168,128], index: 1, kind: input, shape index: {}]   ;;  %s1394_s2 = inlined_call_operand.vmem [shape: f32[1,256], index: 2, kind: output, shape index: {}]  }
   0x1   :  { %s15_s10 = sshll.u32 %s1151_s9, 4  ;;  %s1127_s13 = scalar_lea.hbm %s1393_s1, 2688  ;;  %s16_s10 = int_to_ptr.vmem [resolvable:$true] %s15_s10 }
   0x2   :  { %p1128_p0 = scmp.ne.s32.totalorder %s1393_s1, %s1127_s13  ;;  %p1131_p1 = scmp.lt.u32.totalorder %s1127_s13, %s1393_s1 }
   0x4   :  { %p1133_p2 = pnand %p1131_p1, %p1128_p0 }
   0x6   :  { %1136 = shalt.err (!%p1133_p2)
}
   0x7   :  { %s1137_s18 = scalar_lea.vmem %s16_s10, 2688  ;;  %p1142_p4 = scmp.lt.s32.totalorder %s16_s10, %s16_s10 }
   0x8   :  { %p1138_p3 = scmp.ne.s32.totalorder %s16_s10, %s1137_s18  ;;  %p1143_p5 = scmp.lt.s32.totalorder %s1137_s18, %s1137_s18 }
   0xa   :  { %p1144_p6 = por %p1143_p5, %p1142_p4 }
   0xc   :  { %p1145_p7 = pnand %p1144_p6, %p1138_p3 }
   0xe   :  { %1148 = shalt.err (!%p1145_p7)
}
   0xf   :  { %s1152_s19 = smov 128   ;;  %s1153_s20 = smov 8  }
  0x10   :  { %21 = dma.hbm_to_vmem [thread:$0]  %s1393_s1, 2688, %s16_s10, [#allocation3], %s1152_s19, %s1152_s19, %s1153_s20  }
  0x11   :  { %1149 = dma.done.wait [#allocation3], 2688  }
  0x12   :  { %1150 = vsyncadd [#allocation3], 4294964608  ;;  %v1154_v0 = vmov 120   ;;  %vm170_vm0 = vcmask 97280   ;;  %v960_v2 = vld [vmem:[%s1392_s0 + $0x40] sm:$0xff]   ;;  %v961_v4 = vld [vmem:[%s1392_s0 + $0x48] sm:$0xff]  }
  0x13   :  { %1125 = vset.pattern.permute.xlu0 %v1154_v0  ;;  %1126 = vset.pattern.permute.xlu1 %v1154_v0  ;;  %vm1187_vm1 = vmpackc.low %vm170_vm0, %vm170_vm0  ;;  %v890_v3 = vld [vmem:[%s1392_s0] sm:$0xff]   ;;  %v1210_v6 = vld [vmem:[#allocation2 + $0x10] sm:$0xff]  ;;  %v1155_v39 = vmov 0.0   ;;  %vm481_vm2 = vcmask 1041408   ;;  %vm1156_vm3 = vmmov 1   ;;  %vm472_vm5 = vcmask 736256  }
  0x14   :  { %1026 = vmatprep.subr.msk.bf16.mxu0 %vm1187_vm1, %v960_v2  ;;  %v1206_v5 = vld [vmem:[#allocation2] sm:$0xff]  ;;  %v953_v7 = vld [vmem:[%s1392_s0 + $0x8] sm:$0xff]   ;;  %122 = vperm.xlu1 %1126, %v1210_v6   ;;  %v962_v8 = vld [vmem:[%s1392_s0 + $0x50] sm:$0xff]   ;;  %vm614_vm6 = vcmask 1045504   ;;  %vm605_vm8 = vcmask 244736  }
  0x15   :  { %1029 = vmatpush3.bf16.xpose.msk.msra.mxu0 %vm1187_vm1, %v890_v3  ;;  %1000 = vmatprep.mubr.msk.f32.mxu0 %vm170_vm0, %v1206_v5  ;;  %v1220_v9 = vld [vmem:[#allocation2 + $0x8] sm:$0xff]  ;;  %v1224_v10 = vld [vmem:[#allocation2 + $0x18] sm:$0xff]  ;;  %v1230_v11 = vld [vmem:[#allocation2 + $0x20] sm:$0xff] }
  0x16   :  { %1032 = vmatprep.subr.msk.bf16.mxu0 %vm1187_vm1, %v961_v4  ;;  %112 = vperm.xlu0 %1125, %v1206_v5   ;;  %v1232_v12 = vld [vmem:[#allocation2 + $0x28] sm:$0xff]  ;;  %v954_v13 = vld [vmem:[%s1392_s0 + $0x10] sm:$0xff]   ;;  %v963_v14 = vld [vmem:[%s1392_s0 + $0x58] sm:$0xff]  }
  0x17   :  { %v95_v15 = vld [vmem:[#allocation2 + $0x30] sm:$0xff]  ;;  %v96_v16 = vld [vmem:[#allocation2 + $0x38] sm:$0xff]  ;;  %v97_v17 = vld [vmem:[#allocation2 + $0x40] sm:$0xff]  ;;  %552 = vmatprep.mubr.f32.mxu1 %v1155_v39 }
  0x18   :  { %127 = vperm.xlu1 %1126, %v1224_v10   ;;  %v98_v18 = vld [vmem:[#allocation2 + $0x48] sm:$0xff]  ;;  %v955_v19 = vld [vmem:[%s1392_s0 + $0x18] sm:$0xff]   ;;  %v964_v20 = vld [vmem:[%s1392_s0 + $0x60] sm:$0xff]  }
  0x19   :  { %v99_v21 = vld [vmem:[#allocation2 + $0x50] sm:$0xff]  ;;  %v100_v22 = vld [vmem:[#allocation2 + $0x58] sm:$0x3]  ;;  %v1256_v23 = vld [vmem:[#allocation2 + $0x60] sm:$0xff] }
  0x1a   :  { %117 = vperm.xlu0 %1125, %v1220_v9   ;;  %v1258_v24 = vld [vmem:[#allocation2 + $0x68] sm:$0xff]  ;;  %v956_v25 = vld [vmem:[%s1392_s0 + $0x20] sm:$0xff]   ;;  %v1264_v26 = vld [vmem:[#allocation2 + $0x70] sm:$0xff] }
  0x1b   :  { %v965_v27 = vld [vmem:[%s1392_s0 + $0x68] sm:$0xff]   ;;  %v1270_v28 = vld [vmem:[#allocation2 + $0x78] sm:$0x3f]  ;;  %v1277_v29 = vld [vmem:[#allocation2 + $0x80] sm:$0xff] }
  0x1c   :  { %137 = vperm.xlu1 %1126, %v1232_v12   ;;  %v1280_v30 = vld [vmem:[#allocation2 + $0x88] sm:$0xff]  ;;  %v1286_v32 = vld [vmem:[#allocation2 + $0x90] sm:$0xff]  ;;  %v1292_v34 = vld [vmem:[#allocation2 + $0x98] sm:$0x3f] }
  0x1d   :  { %1035 = vmatpush3.bf16.xpose.msk.msra.mxu0 %vm1187_vm1, %v953_v7  ;;  %v957_v31 = vld [vmem:[%s1392_s0 + $0x28] sm:$0xff]   ;;  %v966_v33 = vld [vmem:[%s1392_s0 + $0x70] sm:$0xff]   ;;  %v1299_v35 = vld [vmem:[#allocation2 + $0xa0] sm:$0x1] }
  0x1e   :  { %1038 = vmatprep.subr.msk.bf16.mxu0 %vm1187_vm1, %v962_v8  ;;  %132 = vperm.xlu0 %1125, %v1230_v11   ;;  %v958_v36 = vld [vmem:[%s1392_s0 + $0x30] sm:$0xff]   ;;  %v967_v37 = vld [vmem:[%s1392_s0 + $0x78] sm:$0xff]   ;;  %vm1093_vm4 = vmpackc.low %vm481_vm2, %vm1156_vm3 }
  0x1f   :  { %v959_v38 = vld [vmem:[%s1392_s0 + $0x38] sm:$0xff]   ;;  %vm1363_vm7 = vmpackc.low %vm614_vm6, %vm1156_vm3 }
  0x20   :  { %147 = vperm.xlu1 %1126, %v96_v16  }
  0x22   :  { %142 = vperm.xlu0 %1125, %v95_v15  }
  0x24   :  { %157 = vperm.xlu1 %1126, %v98_v18  }
  0x25   :  { %1041 = vmatpush3.bf16.xpose.msk.msra.mxu0 %vm1187_vm1, %v954_v13 }
  0x26   :  { %1044 = vmatprep.subr.msk.bf16.mxu0 %vm1187_vm1, %v963_v14  ;;  %152 = vperm.xlu0 %1125, %v97_v17  }
  0x28   :  { %167 = vperm.xlu1 %1126, %v100_v22  }
  0x2a   :  { %162 = vperm.xlu0 %1125, %v99_v21  }
  0x2c   :  { %459 = vperm.xlu1 %1126, %v1258_v24  }
  0x2d   :  { %1047 = vmatpush3.bf16.xpose.msk.msra.mxu0 %vm1187_vm1, %v955_v19 }
  0x2e   :  { %1050 = vmatprep.subr.msk.bf16.mxu0 %vm1187_vm1, %v964_v20  ;;  %454 = vperm.xlu0 %1125, %v1256_v23  }
  0x30   :  { %469 = vperm.xlu1 %1126, %v1270_v28  }
  0x32   :  { %464 = vperm.xlu0 %1125, %v1264_v26  }
  0x34   :  { %592 = vperm.xlu1 %1126, %v1280_v30  }
  0x35   :  { %1053 = vmatpush3.bf16.xpose.msk.msra.mxu0 %vm1187_vm1, %v956_v25 }
  0x36   :  { %1056 = vmatprep.subr.msk.bf16.mxu0 %vm1187_vm1, %v965_v27  ;;  %587 = vperm.xlu0 %1125, %v1277_v29  }
  0x38   :  { %602 = vperm.xlu1 %1126, %v1292_v34  }
  0x3a   :  { %597 = vperm.xlu0 %1125, %v1286_v32  }
  0x3d   :  { %1059 = vmatpush3.bf16.xpose.msk.msra.mxu0 %vm1187_vm1, %v957_v31 }
  0x3e   :  { %1062 = vmatprep.subr.msk.bf16.mxu0 %vm1187_vm1, %v966_v33  ;;  %720 = vperm.xlu0 %1125, %v1299_v35  }
  0x45   :  { %1065 = vmatpush3.bf16.xpose.msk.msra.mxu0 %vm1187_vm1, %v958_v36 }
  0x46   :  { %1068 = vmatprep.subr.msk.bf16.mxu0 %vm1187_vm1, %v967_v37 }
  0x4d   :  { %1071 = vmatpush3.bf16.xpose.msk.msra.mxu0 %vm1187_vm1, %v959_v38 }
  0x54   :  { %1001 = vmatmul.mubr.msk.f32.vlgmr.msra.gmra.mrb[0].mxu0 %vm170_vm0, %v1206_v5 }
  0x55   :  { %1002 = vmatprep.mubr.msk.f32.mxu0 %vm170_vm0, %v1220_v9 }
  0x58   :  { %1003 = vmatmul.mubr.msk.f32.gmra.mrb[2].mxu0 %vm170_vm0, %v1220_v9 }
  0x59   :  { %1004 = vmatprep.mubr.msk.f32.mxu0 %vm170_vm0, %v1210_v6 }
  0x5c   :  { %1005 = vmatmul.mubr.msk.f32.gmra.mrb[4].mxu0 %vm170_vm0, %v1210_v6 }
  0x5d   :  { %1006 = vmatprep.mubr.msk.f32.mxu0 %vm170_vm0, %v1224_v10 }
  0x60   :  { %1007 = vmatmul.mubr.msk.f32.gmra.mrb[6].mxu0 %vm170_vm0, %v1224_v10 }
  0x61   :  { %1008 = vmatprep.mubr.msk.f32.mxu0 %vm170_vm0, %v1230_v11 }
  0x64   :  { %1009 = vmatmul.mubr.msk.f32.gmra.mrb[8].mxu0 %vm170_vm0, %v1230_v11 }
  0x65   :  { %1010 = vmatprep.mubr.msk.f32.mxu0 %vm170_vm0, %v1232_v12 }
  0x68   :  { %1011 = vmatmul.mubr.msk.f32.gmra.mrb[10].mxu0 %vm170_vm0, %v1232_v12 }
  0x69   :  { %1012 = vmatprep.mubr.msk.f32.mxu0 %vm170_vm0, %v95_v15 }
  0x6c   :  { %1013 = vmatmul.mubr.msk.f32.gmra.mrb[12].mxu0 %vm170_vm0, %v95_v15 }
  0x6d   :  { %1014 = vmatprep.mubr.msk.f32.mxu0 %vm170_vm0, %v96_v16 }
  0x70   :  { %1015 = vmatmul.mubr.msk.f32.gmra.mrb[14].mxu0 %vm170_vm0, %v96_v16 }
  0x71   :  { %1016 = vmatprep.mubr.msk.f32.mxu0 %vm170_vm0, %v97_v17 }
  0x74   :  { %1017 = vmatmul.mubr.msk.f32.gmra.mrb[16].mxu0 %vm170_vm0, %v97_v17 }
  0x75   :  { %1018 = vmatprep.mubr.msk.f32.mxu0 %vm170_vm0, %v98_v18 }
  0x78   :  { %1019 = vmatmul.mubr.msk.f32.gmra.mrb[18].mxu0 %vm170_vm0, %v98_v18 }
  0x79   :  { %1020 = vmatprep.mubr.msk.f32.mxu0 %vm170_vm0, %v99_v21 }
  0x7c   :  { %1021 = vmatmul.mubr.msk.f32.gmra.mrb[20].mxu0 %vm170_vm0, %v99_v21 }
  0x7d   :  { %1022 = vmatprep.mubr.msk.f32.mxu0 %vm170_vm0, %v100_v22 }
  0x80   :  { %1023 = vmatmul.mubr.msk.f32.gmra.mrb[22].mxu0 %vm170_vm0, %v100_v22 }
  0x93   :  { %v123_v49 = vpop.permute.xlu1 %122 }
  0x95   :  { %v113_v40 = vpop.permute.xlu0 %112 }
  0x97   :  { %v128_v60 = vpop.permute.xlu1 %127 }
  0x99   :  { %v118_v44 = vpop.permute.xlu0 %117 }
  0x9b   :  { %v138_v12 = vpop.permute.xlu1 %137 }
  0x9d   :  { %v133_v9 = vpop.permute.xlu0 %132 }
  0x9f   :  { %v148_v37 = vpop.permute.xlu1 %147 }
  0xa1   :  { %v143_v31 = vpop.permute.xlu0 %142 }
 0x127   :  { %v357_v41 = vpop.f32.mrb[0].mxu0 }
 0x128   :  { %v359_v42 = vpop.f32.mrb[1].mxu0  ;;  %v358_v43 = vadd.f32 %v357_v41, %v113_v40 }
 0x129   :  { %v360_v45 = vadd.f32 %v359_v42, %v113_v40 }
 0x12a   :  { %v428_v51 = vmax.f32 %v358_v43, 0.0 }
 0x12b   :  { %v363_v46 = vpop.f32.mrb[2].mxu0  ;;  %v429_v53 = vmax.f32 %v360_v45, 0.0 }
 0x12c   :  { %v364_v47 = vadd.f32 %v363_v46, %v118_v44  ;;  %v365_v48 = vpop.f32.mrb[3].mxu0 }
 0x12d   :  { %v366_v50 = vadd.f32 %v365_v48, %v118_v44 }
 0x12e   :  { %v430_v52 = vmax.f32 %v364_v47, 0.0 }
 0x12f   :  { %v431_v54 = vmax.f32 %v366_v50, 0.0  ;;  %v369_v55 = vpop.f32.mrb[4].mxu0 }
 0x130   :  { %v371_v56 = vpop.f32.mrb[5].mxu0  ;;  %v1074_v57 = vpack.c.bf16 %v430_v52, %v428_v51  ;;  %v370_v59 = vadd.f32 %v369_v55, %v123_v49  ;;  %v153_v51 = vpop.permute.xlu0 %152 }
 0x131   :  { %v1072_v58 = vpack.c.bf16 %v431_v54, %v429_v53  ;;  %v372_v61 = vadd.f32 %v371_v56, %v123_v49  ;;  %v158_v54 = vpop.permute.xlu1 %157 }
 0x132   :  { %v432_v2 = vmax.f32 %v370_v59, 0.0 }
 0x133   :  { %v375_v62 = vpop.f32.mrb[6].mxu0  ;;  %1073 = vmatprep.subr.bf16.mxu1 %v1072_v58  ;;  %v433_v4 = vmax.f32 %v372_v61, 0.0 }
 0x134   :  { %v376_v63 = vadd.f32 %v375_v62, %v128_v60  ;;  %v377_v0 = vpop.f32.mrb[7].mxu0  ;;  %1075 = vmatpush1.bf16.msra.mxu1 %v1074_v57 }
 0x135   :  { %v378_v1 = vadd.f32 %v377_v0, %v128_v60 }
 0x136   :  { %v434_v3 = vmax.f32 %v376_v63, 0.0 }
 0x137   :  { %v435_v5 = vmax.f32 %v378_v1, 0.0  ;;  %v381_v6 = vpop.f32.mrb[8].mxu0 }
 0x138   :  { %v1078_v7 = vpack.c.bf16 %v434_v3, %v432_v2  ;;  %v383_v8 = vpop.f32.mrb[9].mxu0  ;;  %v382_v11 = vadd.f32 %v381_v6, %v133_v9  ;;  %v163_v3 = vpop.permute.xlu0 %162 }
 0x139   :  { %v1076_v10 = vpack.c.bf16 %v435_v5, %v433_v4  ;;  %v384_v13 = vadd.f32 %v383_v8, %v133_v9  ;;  %v168_v6 = vpop.permute.xlu1 %167 }
 0x13a   :  { %v436_v18 = vmax.f32 %v382_v11, 0.0 }
 0x13b   :  { %v387_v14 = vpop.f32.mrb[10].mxu0  ;;  %1077 = vmatprep.subr.bf16.mxu1 %v1076_v10  ;;  %v437_v20 = vmax.f32 %v384_v13, 0.0 }
 0x13c   :  { %v388_v15 = vadd.f32 %v387_v14, %v138_v12  ;;  %v389_v16 = vpop.f32.mrb[11].mxu0  ;;  %1079 = vmatpush1.bf16.msra.mxu1 %v1078_v7 }
 0x13d   :  { %v390_v17 = vadd.f32 %v389_v16, %v138_v12 }
 0x13e   :  { %v438_v19 = vmax.f32 %v388_v15, 0.0 }
 0x13f   :  { %v439_v21 = vmax.f32 %v390_v17, 0.0  ;;  %v393_v22 = vpop.f32.mrb[12].mxu0 }
 0x140   :  { %v1082_v25 = vpack.c.bf16 %v438_v19, %v436_v18  ;;  %v395_v27 = vpop.f32.mrb[13].mxu0  ;;  %v394_v36 = vadd.f32 %v393_v22, %v143_v31  ;;  %v460_v22 = vpop.permute.xlu1 %459 }
 0x141   :  { %v1080_v33 = vpack.c.bf16 %v439_v21, %v437_v20  ;;  %v396_v38 = vadd.f32 %v395_v27, %v143_v31  ;;  %v455_v20 = vpop.permute.xlu0 %454 }
 0x142   :  { %v440_v44 = vmax.f32 %v394_v36, 0.0 }
 0x143   :  { %v399_v40 = vpop.f32.mrb[14].mxu0  ;;  %1081 = vmatprep.subr.bf16.mxu1 %v1080_v33  ;;  %v441_v46 = vmax.f32 %v396_v38, 0.0 }
 0x144   :  { %v400_v41 = vadd.f32 %v399_v40, %v148_v37  ;;  %v401_v42 = vpop.f32.mrb[15].mxu0  ;;  %1083 = vmatpush1.bf16.msra.mxu1 %v1082_v25 }
 0x145   :  { %v402_v43 = vadd.f32 %v401_v42, %v148_v37 }
 0x146   :  { %v442_v45 = vmax.f32 %v400_v41, 0.0 }
 0x147   :  { %v443_v47 = vmax.f32 %v402_v43, 0.0  ;;  %v405_v48 = vpop.f32.mrb[16].mxu0 }
 0x148   :  { %v1086_v49 = vpack.c.bf16 %v442_v45, %v440_v44  ;;  %v407_v50 = vpop.f32.mrb[17].mxu0  ;;  %v406_v53 = vadd.f32 %v405_v48, %v153_v51  ;;  %v470_v44 = vpop.permute.xlu1 %469 }
 0x149   :  { %v1084_v52 = vpack.c.bf16 %v443_v47, %v441_v46  ;;  %v408_v55 = vadd.f32 %v407_v50, %v153_v51 }
 0x14a   :  { %v444_v60 = vmax.f32 %v406_v53, 0.0 }
 0x14b   :  { %v411_v56 = vpop.f32.mrb[18].mxu0  ;;  %1085 = vmatprep.subr.bf16.mxu1 %v1084_v52  ;;  %v445_v62 = vmax.f32 %v408_v55, 0.0 }
 0x14c   :  { %v412_v57 = vadd.f32 %v411_v56, %v158_v54  ;;  %v413_v58 = vpop.f32.mrb[19].mxu0  ;;  %1087 = vmatpush1.bf16.msra.mxu1 %v1086_v49 }
 0x14d   :  { %v414_v59 = vadd.f32 %v413_v58, %v158_v54 }
 0x14e   :  { %v446_v61 = vmax.f32 %v412_v57, 0.0 }
 0x14f   :  { %v447_v63 = vmax.f32 %v414_v59, 0.0  ;;  %v417_v0 = vpop.f32.mrb[20].mxu0 }
 0x150   :  { %v1090_v1 = vpack.c.bf16 %v446_v61, %v444_v60  ;;  %v419_v2 = vpop.f32.mrb[21].mxu0  ;;  %v418_v5 = vadd.f32 %v417_v0, %v163_v3  ;;  %v593_v60 = vpop.permute.xlu1 %592 }
 0x151   :  { %v1088_v4 = vpack.c.bf16 %v447_v63, %v445_v62  ;;  %v420_v7 = vadd.f32 %v419_v2, %v163_v3 }
 0x152   :  { %v448_v12 = vmax.f32 %v418_v5, 0.0 }
 0x153   :  { %v423_v8 = vpop.f32.mrb[22].mxu0  ;;  %1089 = vmatprep.subr.bf16.mxu1 %v1088_v4  ;;  %v449_v14 = vmax.f32 %v420_v7, 0.0 }
 0x154   :  { %v424_v9 = vadd.f32 %v423_v8, %v168_v6  ;;  %v425_v10 = vpop.f32.mrb[23].mxu0  ;;  %1091 = vmatpush1.bf16.msra.mxu1 %v1090_v1  ;;  %v603_v8 = vpop.permute.xlu1 %602 }
 0x155   :  { %v426_v11 = vadd.f32 %v425_v10, %v168_v6 }
 0x156   :  { %v450_v13 = vmax.f32 %v424_v9, 0.0 }
 0x157   :  { %v451_v15 = vmax.f32 %v426_v11, 0.0 }
 0x158   :  { %v1095_v16 = vpack.c.bf16 %v450_v13, %v448_v12 }
 0x159   :  { %v1092_v17 = vpack.c.bf16 %v451_v15, %v449_v14 }
 0x15b   :  { %1094 = vmatprep.subr.msk.bf16.mxu1 %vm1093_vm4, %v1092_v17 }
 0x15c   :  { %1097 = vmatpush1.bf16.msk.msra.mxu1 %vm1093_vm4, %v1095_v16 }
 0x15f   :  { %876 = vmatmul.mubr.msk.f32.vlgmr.msra.gmra.mrb[0].mxu1 %vm472_vm5, %v1256_v23 }
 0x160   :  { %558 = vmatprep.mubr.f32.mxu1 %v1155_v39 }
 0x163   :  { %877 = vmatmul.mubr.msk.f32.gmra.mrb[2].mxu1 %vm472_vm5, %v1258_v24 }
 0x164   :  { %564 = vmatprep.mubr.f32.mxu1 %v1155_v39 }
 0x167   :  { %878 = vmatmul.mubr.msk.f32.gmra.mrb[4].mxu1 %vm472_vm5, %v1264_v26 }
 0x168   :  { %570 = vmatprep.mubr.f32.mxu1 %v1155_v39 }
 0x16b   :  { %879 = vmatmul.mubr.msk.f32.gmra.mrb[6].mxu1 %vm472_vm5, %v1270_v28  ;;  %v465_v28 = vpop.permute.xlu0 %464 }
 0x16c   :  { %685 = vmatprep.mubr.f32.mxu1 %v1155_v39 }
 0x232   :  { %v554_v18 = vpop.f32.mrb[0].mxu1 }
 0x233   :  { %v556_v19 = vpop.f32.mrb[1].mxu1  ;;  %v555_v21 = vadd.f32 %v554_v18, %v455_v20 }
 0x234   :  { %v557_v23 = vadd.f32 %v556_v19, %v455_v20  ;;  %v1157_v20 = vmov 1966171168  }
 0x235   :  { %v577_v33 = vmax.f32 %v555_v21, 0.0  ;;  %v806_v21 = vunpack.c.l.s4 %v1157_v20 }
 0x236   :  { %v560_v25 = vpop.f32.mrb[2].mxu1  ;;  %v578_v37 = vmax.f32 %v557_v23, 0.0 }
 0x237   :  { %v561_v27 = vadd.f32 %v560_v25, %v460_v22  ;;  %v562_v31 = vpop.f32.mrb[3].mxu1  ;;  %v807_v23 = vunpack.c.0.s8 %v806_v21 }
 0x238   :  { %v563_v24 = vadd.f32 %v562_v31, %v460_v22  ;;  %v808_v22 = vlaneseq }
 0x239   :  { %v579_v36 = vmax.f32 %v561_v27, 0.0 }
 0x23a   :  { %v580_v26 = vmax.f32 %v563_v24, 0.0  ;;  %v566_v38 = vpop.f32.mrb[4].mxu1  ;;  %v809_v25 = vshrl.u32 %v808_v22, 7  ;;  %vm822_vm9 = vcmp.lt.s32.totalorder %v808_v22, 256 }
 0x23b   :  { %v1100_v40 = vpack.c.bf16 %v579_v36, %v577_v33  ;;  %v568_v41 = vpop.f32.mrb[5].mxu1  ;;  %v567_v43 = vadd.f32 %v566_v38, %v465_v28 }
 0x23c   :  { %v1098_v42 = vpack.c.bf16 %v580_v26, %v578_v37  ;;  %v569_v45 = vadd.f32 %v568_v41, %v465_v28  ;;  %v810_v37 = vsub.s32 %v807_v23, %v809_v25 }
 0x23d   :  { %v581_v50 = vmax.f32 %v567_v43, 0.0 }
 0x23e   :  { %v572_v46 = vpop.f32.mrb[6].mxu1  ;;  %1099 = vmatprep.subr.bf16.mxu1 %v1098_v42  ;;  %v582_v52 = vmax.f32 %v569_v45, 0.0 }
 0x23f   :  { %v573_v47 = vadd.f32 %v572_v46, %v470_v44  ;;  %v574_v48 = vpop.f32.mrb[7].mxu1  ;;  %1101 = vmatpush1.bf16.msra.mxu1 %v1100_v40 }
 0x240   :  { %v575_v49 = vadd.f32 %v574_v48, %v470_v44 }
 0x241   :  { %v583_v51 = vmax.f32 %v573_v47, 0.0 }
 0x242   :  { %v584_v53 = vmax.f32 %v575_v49, 0.0 }
 0x243   :  { %v1105_v54 = vpack.c.bf16 %v583_v51, %v581_v50 }
 0x244   :  { %v1102_v56 = vpack.c.bf16 %v584_v53, %v582_v52 }
 0x246   :  { %1104 = vmatprep.subr.msk.bf16.mxu1 %vm1363_vm7, %v1102_v56 }
 0x247   :  { %1107 = vmatpush1.bf16.msk.msra.mxu1 %vm1363_vm7, %v1105_v54 }
 0x24a   :  { %882 = vmatmul.mubr.msk.f32.vlgmr.msra.gmra.mrb[8].mxu1 %vm605_vm8, %v1277_v29  ;;  %v588_v29 = vpop.permute.xlu0 %587 }
 0x24b   :  { %691 = vmatprep.mubr.f32.mxu1 %v1155_v39 }
 0x24e   :  { %883 = vmatmul.mubr.msk.f32.gmra.mrb[10].mxu1 %vm605_vm8, %v1280_v30 }
 0x24f   :  { %697 = vmatprep.mubr.f32.mxu1 %v1155_v39 }
 0x252   :  { %884 = vmatmul.mubr.msk.f32.gmra.mrb[12].mxu1 %vm605_vm8, %v1286_v32 }
 0x253   :  { %703 = vmatprep.mubr.f32.mxu1 %v1155_v39 }
 0x256   :  { %885 = vmatmul.mubr.msk.f32.gmra.mrb[14].mxu1 %vm605_vm8, %v1292_v34  ;;  %v598_v34 = vpop.permute.xlu0 %597 }
 0x257   :  { %795 = vmatprep.mubr.f32.mxu1 %v1155_v39 }
 0x25a   :  { %v721_v27 = vpop.permute.xlu0 %720 }
 0x31d   :  { %v687_v57 = vpop.f32.mrb[8].mxu1 }
 0x31e   :  { %v689_v58 = vpop.f32.mrb[9].mxu1  ;;  %v688_v59 = vadd.f32 %v687_v57, %v588_v29 }
 0x31f   :  { %v690_v61 = vadd.f32 %v689_v58, %v588_v29 }
 0x320   :  { %v710_v1 = vmax.f32 %v688_v59, 0.0 }
 0x321   :  { %v693_v62 = vpop.f32.mrb[10].mxu1  ;;  %v711_v32 = vmax.f32 %v690_v61, 0.0 }
 0x322   :  { %v694_v30 = vadd.f32 %v693_v62, %v593_v60  ;;  %v695_v63 = vpop.f32.mrb[11].mxu1 }
 0x323   :  { %v696_v0 = vadd.f32 %v695_v63, %v593_v60 }
 0x324   :  { %v712_v2 = vmax.f32 %v694_v30, 0.0 }
 0x325   :  { %v713_v3 = vmax.f32 %v696_v0, 0.0  ;;  %v699_v4 = vpop.f32.mrb[12].mxu1 }
 0x326   :  { %v1110_v5 = vpack.c.bf16 %v712_v2, %v710_v1  ;;  %v701_v6 = vpop.f32.mrb[13].mxu1  ;;  %v700_v39 = vadd.f32 %v699_v4, %v598_v34 }
 0x327   :  { %v1108_v7 = vpack.c.bf16 %v713_v3, %v711_v32  ;;  %v702_v9 = vadd.f32 %v701_v6, %v598_v34 }
 0x328   :  { %v714_v14 = vmax.f32 %v700_v39, 0.0 }
 0x329   :  { %v705_v10 = vpop.f32.mrb[14].mxu1  ;;  %1109 = vmatprep.subr.bf16.mxu1 %v1108_v7  ;;  %v715_v16 = vmax.f32 %v702_v9, 0.0 }
 0x32a   :  { %v706_v11 = vadd.f32 %v705_v10, %v603_v8  ;;  %v707_v12 = vpop.f32.mrb[15].mxu1  ;;  %1111 = vmatpush1.bf16.msra.mxu1 %v1110_v5 }
 0x32b   :  { %v708_v13 = vadd.f32 %v707_v12, %v603_v8 }
 0x32c   :  { %v716_v15 = vmax.f32 %v706_v11, 0.0 }
 0x32d   :  { %v717_v17 = vmax.f32 %v708_v13, 0.0 }
 0x32e   :  { %v1115_v18 = vpack.c.bf16 %v716_v15, %v714_v14 }
 0x32f   :  { %v1112_v19 = vpack.c.bf16 %v717_v17, %v715_v16 }
 0x331   :  { %1114 = vmatprep.subr.msk.bf16.mxu1 %vm1363_vm7, %v1112_v19 }
 0x332   :  { %1117 = vmatpush1.bf16.msk.msra.mxu1 %vm1363_vm7, %v1115_v18 }
 0x335   :  { %888 = vmatmul.mubr.msk.f32.vlgmr.msra.gmra.mrb[16].mxu1 %vm605_vm8, %v1299_v35 }
 0x408   :  { %v797_v31 = vpop.f32.mrb[16].mxu1 }
 0x409   :  { %v798_v24 = vadd.f32 %v797_v31, %v721_v27  ;;  %v799_v33 = vpop.f32.mrb[17].mxu1 }
 0x40a   :  { %v800_v36 = vadd.f32 %v799_v33, %v721_v27 }
 0x40c   :  { %v804_v26 = vcombine.low %v798_v24, %v800_v36 }
 0x40e   :  { %v811_v38 = vrot.slane %v804_v26, %v810_v37 }
 0x410   :  { %v818_v40 = vrot.slane %v811_v38, %v810_v37 }
 0x412   :  { %824 = vst.msk [vmem:[%s1394_s2] sm:$0x3] %vm822_vm9, %v818_v40 }
 0x413   :  { %829 = vsyncpa [#allocation3], 1 }

</bundles_post_ra>
